<compile_context>
chip_gen: v6e
topology: v6e:2x2x1
jax: 0.10.0
libtpu: 0.0.40
codegen_flags: <defaults>
</compile_context>

<pallas_src>
import math

import jax
import jax.numpy as jnp
from jax.experimental import pallas as pl
from jax.experimental.pallas import tpu as pltpu

_LANES = 128
_MIN_SPLIT_BYTES = 512 * 1024   # arrays above this always get >= 2 grid steps


def _make_sinerelu_kernel(epsilon: float):
    # eps*(sin(x) - cos(x)) == eps*sqrt(2)*sin(x - pi/4): one range-reduction
    # + polynomial instead of two.  (sin lowers to VALU ops, not EUP.)
    scale = float(epsilon) * math.sqrt(2.0)
    shift = math.pi / 4.0

    def kernel(x_ref, o_ref):
        x = x_ref[...]
        xf = x.astype(jnp.float32)
        # TODO(synk): if a v7x bundle dump shows this flips to VALU-bound,
        # swap jnp.sin for a low-degree bounded-range minimax poly (abs err
        # ~1e-4 is invisible after the eps scale) / keep bf16 packed.
        neg = (scale * jnp.sin(xf - shift)).astype(x.dtype)
        o_ref[...] = jnp.where(x > 0, x, neg)

    return kernel


def _tpu_block_budget():
    """Per-generation (target block bytes, vmem_limit_bytes or None)."""
    try:
        kind = jax.devices()[0].device_kind.lower()
    except Exception:
        kind = ""
    if "v7" in kind or "tpu7" in kind.replace(" ", ""):
        # v7x: ~3.2 TB/s HBM per TC -> big blocks to hide per-step overhead.
        # 2 in + 2 out double buffers x 8 MiB = 32 MiB, so raise the scoped
        # VMEM limit (physical VMEM is 64 MiB per TC).
        return 8 << 20, 40 << 20
    if "v6" in kind:
        # v6e: ~1.4 TB/s; 4 MiB blocks -> 16 MiB of buffers < 32 MiB default.
        return 4 << 20, None
    # v5e and older / unknown: 16 MiB default scoped VMEM -> keep 2 MiB blocks.
    return 2 << 20, None


def _choose_block_rows(rows: int, sublane: int, itemsize: int, target_bytes: int) -> int:
    """Rows per block for a (rows, 128) slab; multiple of `sublane` or == rows."""
    row_bytes = _LANES * itemsize
    total_bytes = rows * row_bytes
    target_rows = max(sublane, (target_bytes // row_bytes) // sublane * sublane)

    if total_bytes <= _MIN_SPLIT_BYTES or rows <= 2 * sublane:
        return rows                      # tiny array: single whole-array block
    # At least 2 grid steps (enables pipelining and keeps both v7x TensorCores
    # busy), rounded up to an EVEN step count for 2-TC load balance.
    steps = max(2, -(-rows // target_rows))          # cdiv
    if steps % 2:
        steps += 1
    block_rows = -(-rows // steps)                   # cdiv
    block_rows = -(-block_rows // sublane) * sublane # round up to sublane
    return max(sublane, min(block_rows, rows))


def sine_relu(x: jax.Array, epsilon: float = 0.01) -> jax.Array:
    """SineReLU activation, matching the PyTorch reference semantics."""
    orig_shape = x.shape
    dtype = x.dtype
    n = x.size
    if n == 0:
        return x

    itemsize = jnp.dtype(dtype).itemsize
    sublane = max(8, 32 // itemsize)     # 8 for f32, 16 for bf16, 32 for int8
    target_bytes, vmem_limit = _tpu_block_budget()

    rows = pl.cdiv(n, _LANES)
    block_rows = _choose_block_rows(rows, sublane, itemsize, target_bytes)

    kernel = _make_sinerelu_kernel(epsilon)
    compiler_params = pltpu.CompilerParams(
        dimension_semantics=("parallel",),
        vmem_limit_bytes=vmem_limit,
    )
    cost = pl.CostEstimate(flops=4 * n, transcendentals=n,
                           bytes_accessed=2 * n * itemsize)
    flat = x.reshape(-1)   # contiguous flatten: layout plumbing only

    if n % _LANES == 0:
        # Common path: lane-dense (rows, 128) slab, blocked along rows.
        x2d = flat.reshape(rows, _LANES)
        out = pl.pallas_call(
            kernel,
            out_shape=jax.ShapeDtypeStruct((rows, _LANES), dtype),
            grid=(pl.cdiv(rows, block_rows),),
            in_specs=[pl.BlockSpec((block_rows, _LANES), lambda i: (i, 0))],
            out_specs=pl.BlockSpec((block_rows, _LANES), lambda i: (i, 0)),
            compiler_params=compiler_params,
            cost_estimate=cost,
        )(x2d)
        return out.reshape(orig_shape)

    # Ragged element count (n % 128 != 0): keep the flat 1D view and tile it
    # with a lane-aligned 1D block; Pallas boundary masking covers the tail.
    # No jnp.pad / trailing-slice round trip -> no extra HBM copies.
    if block_rows >= rows:
        block_elems = n                       # single block == full extent
    else:
        block_elems = block_rows * _LANES     # multiple of 128 (and of 1024)
    out = pl.pallas_call(
        kernel,
        out_shape=jax.ShapeDtypeStruct((n,), dtype),
        grid=(pl.cdiv(n, block_elems),),
        in_specs=[pl.BlockSpec((block_elems,), lambda i: (i,))],
        out_specs=pl.BlockSpec((block_elems,), lambda i: (i,)),
        compiler_params=compiler_params,
        cost_estimate=cost,
    )(flat)
    return out.reshape(orig_shape)


def sine_relu_ref(x: jax.Array, epsilon: float = 0.01) -> jax.Array:
    """Pure-JAX reference mirroring the PyTorch sineReLU_."""
    pos = (x > 0).astype(x.dtype)
    neg = (x <= 0).astype(x.dtype)
    return pos * x + neg * epsilon * (jnp.sin(x) - jnp.cos(x))


if __name__ == "__main__":
    key = jax.random.PRNGKey(0)
    k1, k2 = jax.random.split(key)

    # NCHW input consistent with a conv-style activation use (spec shape).
    x = jax.random.normal(k1, (2, 4, 16, 16), dtype=jnp.float32)
    out = jax.block_until_ready(sine_relu(x, epsilon=0.01))
    ref = sine_relu_ref(x, epsilon=0.01)
    assert out.shape == x.shape and out.dtype == x.dtype
    assert jnp.allclose(out, ref, atol=1e-6, rtol=1e-6)

    # bf16 path: select stays in bf16, sin evaluated in f32 then cast back.
    xb = x.astype(jnp.bfloat16)
    outb = jax.block_until_ready(sine_relu(xb, epsilon=0.01))
    refb = sine_relu_ref(xb, epsilon=0.01)
    assert outb.shape == xb.shape and outb.dtype == jnp.bfloat16
    assert jnp.allclose(outb.astype(jnp.float32), refb.astype(jnp.float32),
                        atol=5e-3, rtol=0.0)

    # Ragged element count (not a multiple of 128): exercises the 1D
    # BlockSpec path (no pad/slice round trip).
    xr = jax.random.normal(k2, (7, 11, 13), dtype=jnp.float32)
    outr = jax.block_until_ready(sine_relu(xr, epsilon=0.01))
    refr = sine_relu_ref(xr, epsilon=0.01)
    assert outr.shape == xr.shape and outr.dtype == xr.dtype
    assert jnp.allclose(outr, refr, atol=1e-6, rtol=1e-6)

    print("KERNEL_OK")
</pallas_src>

<mosaic_0001>
module attributes {stable_mosaic.version = 11 : i64} {
  func.func @kernel(%arg0: i32, %arg1: memref<16x128xf32, #tpu.memory_space<vmem>>, %arg2: memref<16x128xf32, #tpu.memory_space<vmem>>) attributes {dimension_semantics = [#tpu.dimension_semantics<parallel>], iteration_bounds = array<i64: 1>, scalar_prefetch = 0 : i64, scratch_operands = 0 : i64, tpu.core_type = #tpu.core_type<tc>, window_params = [{transform_indices = @transform_0, window_bounds = array<i64: 16, 128>}, {transform_indices = @transform_1, window_bounds = array<i64: 16, 128>}]} {
    %c0 = arith.constant 0 : index
    %c0_0 = arith.constant 0 : index
    %0 = vector.load %arg1[%c0, %c0_0] : memref<16x128xf32, #tpu.memory_space<vmem>>, vector<16x128xf32>
    %cst = arith.constant 0.785398185 : f32
    %1 = vector.broadcast %cst : f32 to vector<16x128xf32>
    %2 = arith.subf %0, %1 : vector<16x128xf32>
    %3 = math.sin %2 : vector<16x128xf32>
    %cst_1 = arith.constant 0.0141421352 : f32
    %4 = vector.broadcast %cst_1 : f32 to vector<16x128xf32>
    %5 = arith.mulf %4, %3 : vector<16x128xf32>
    %cst_2 = arith.constant 0.000000e+00 : f32
    %6 = vector.broadcast %cst_2 : f32 to vector<16x128xf32>
    %7 = arith.cmpf ogt, %0, %6 : vector<16x128xf32>
    %8 = arith.select %7, %0, %5 : vector<16x128xi1>, vector<16x128xf32>
    %c0_3 = arith.constant 0 : index
    %c0_4 = arith.constant 0 : index
    %9 = vector.load %arg2[%c0_3, %c0_4] : memref<16x128xf32, #tpu.memory_space<vmem>>, vector<16x128xf32>
    tpu.vector_store %arg2[%c0_3, %c0_4], %8 {strides = array<i32>} : memref<16x128xf32, #tpu.memory_space<vmem>>, vector<16x128xf32>,
    return
  }
  func.func @transform_0(%arg0: i32) -> (i32, i32) {
    %c0_i32 = arith.constant 0 : i32
    %c0_i32_0 = arith.constant 0 : i32
    return %arg0, %c0_i32 : i32, i32
  }
  func.func @transform_1(%arg0: i32) -> (i32, i32) {
    %c0_i32 = arith.constant 0 : i32
    %c0_i32_0 = arith.constant 0 : i32
    return %arg0, %c0_i32 : i32, i32
  }
}

</mosaic_0001>

<bundles_post_ra>
// kernel: tpu_custom_call.1
= control target key start
LH: loop header
LB: loop body
LE: loop exit
PB: predicated region body
PF: predicated region fallthrough
CT: control target
= control target key end

     0   :  { %6 = vsyncpa [#allocation3], 0  ;;  %s460_s0 = inlined_call_operand.hbm [shape: f32[16,128], index: 0, kind: input, shape index: {}]   ;;  %s461_s1 = inlined_call_operand.hbm [shape: f32[16,128], index: 1, kind: output, shape index: {}]  }
   0x1   :  { %7 = vsyncpa [#allocation4], 0  ;;  %s340_s6 = smov [#allocation2]  }
   0x2   :  { %s13_s7 = sshll.u32 %s340_s6, 4  ;;  %s14_s7 = int_to_ptr.vmem [resolvable:$true] %s13_s7 }
   0x3   :  { %s304_s8 = scalar_lea.vmem %s14_s7, 256  ;;  %p309_p1 = scmp.lt.s32.totalorder %s14_s7, %s14_s7 }
   0x4   :  { %p305_p0 = scmp.ne.s32.totalorder %s14_s7, %s304_s8  ;;  %p310_p2 = scmp.lt.s32.totalorder %s304_s8, %s304_s8 }
   0x6   :  { %p311_p3 = por %p310_p2, %p309_p1 }
   0x8   :  { %p312_p4 = pnand %p311_p3, %p305_p0 }
   0xa   :  { %315 = shalt.err (!%p312_p4)
}
   0xb   :  { %s341_s9 = smov 128   ;;  %s342_s10 = smov 8  }
   0xc   :  { %19 = dma.hbm_to_vmem [thread:$0]  %s460_s0, 256, %s14_s7, [#allocation3], %s341_s9, %s341_s9, %s342_s10  }
   0xd   :  { %336 = dma.done.wait [#allocation3], 256  }
   0xe   :  { %337 = vsyncadd [#allocation3], 4294967040  ;;  %v366_v0 = vld [vmem:[#allocation2] sm:$0xff]  ;;  %v368_v1 = vld [vmem:[#allocation2 + $0x8] sm:$0xff]  ;;  %v343_v26 = vmov 683565275  }
   0xf   :  { %v371_v2 = vadd.f32 -0.7853982, %v366_v0  ;;  %v374_v3 = vadd.f32 -0.7853982, %v368_v1  ;;  %v344_v28 = vmov 2475754826  }
  0x10   :  { %v345_v30 = vmov 2131351028   ;;  %v346_v32 = vmov 2102212464   ;;  %v347_v34 = vmov 920167782  }
  0x11   :  { %v27_v4 = vand.u32 2147483647, %v371_v2  ;;  %v30_v5 = vand.u32 2139095040, %v371_v2  ;;  %v131_v6 = vand.u32 2147483647, %v374_v3  ;;  %v134_v7 = vand.u32 2139095040, %v374_v3 }
  0x12   :  { %v348_v42 = vmov 1326507024   ;;  %vm29_vm14 = vcmp.lt.s32.totalorder %v371_v2, 0  ;;  %s349_s0 = smov [#allocation5]  }
  0x13   :  { %v31_v8 = vshrl.u32 %v30_v5, 23  ;;  %v34_v9 = vand.u32 8388607, %v27_v4  ;;  %v135_v10 = vshrl.u32 %v134_v7, 23  ;;  %v138_v11 = vand.u32 8388607, %v131_v6 }
  0x14   :  { %vm435_vm15 = vcmp.le.f32.partialorder %v27_v4, 0.7853982  ;;  %s248_s13 = sshll.u32 %s349_s0, 4  ;;  %s249_s13 = int_to_ptr.vmem [resolvable:$true] %s248_s13 }
  0x15   :  { %v262_v12 = vadd.s32 4294967169, %v31_v8  ;;  %v266_v13 = vadd.s32 4294967169, %v135_v10  ;;  %v35_v15 = vor.u32 8388608, %v34_v9  ;;  %v139_v16 = vor.u32 8388608, %v138_v11  ;;  %s316_s14 = scalar_lea.vmem %s249_s13, 256  ;;  %p321_p6 = scmp.lt.s32.totalorder %s249_s13, %s249_s13 }
  0x16   :  { %p317_p5 = scmp.ne.s32.totalorder %s249_s13, %s316_s14  ;;  %p322_p7 = scmp.lt.s32.totalorder %s316_s14, %s316_s14 }
  0x17   :  { %v37_v14 = vadd.s32 1, %v262_v12  ;;  %v141_v17 = vadd.s32 1, %v266_v13  ;;  %v384_v22 = vshll.u32 %v35_v15, 8  ;;  %v386_v24 = vshll.u32 %v139_v16, 8 }
  0x18   :  { %p323_p8 = por %p322_p7, %p321_p6 }
  0x19   :  { %vm38_vm0 = vcmp.gt.s32.totalorder %v37_v14, 0  ;;  %vm142_vm1 = vcmp.gt.s32.totalorder %v141_v17, 0 }
  0x1a   :  { %v39_v18 = vsel %vm38_vm0, %v37_v14, 0  ;;  %v143_v21 = vsel %vm142_vm1, %v141_v17, 0  ;;  %vm133_vm0 = vcmp.lt.s32.totalorder %v374_v3, 0  ;;  %vm132_vm1 = vcmp.le.f32.partialorder %v131_v6, 0.7853982  ;;  %p324_p9 = pnand %p323_p8, %p317_p5 }
  0x1b   :  { %v40_v19 = vshrl.u32 %v39_v18, 5  ;;  %v41_v20 = vand.u32 31, %v39_v18  ;;  %v145_v23 = vand.u32 31, %v143_v21  ;;  %v388_v36 = vshrl.u32 %v143_v21, 5 }
  0x1d   :  { %v42_v25 = vsub.s32 32, %v41_v20  ;;  %v44_v27 = vshll.u32 %v343_v26, %v41_v20  ;;  %v47_v29 = vshll.u32 %v344_v28, %v41_v20  ;;  %v50_v31 = vshll.u32 %v345_v30, %v41_v20 }
  0x1e   :  { %v53_v33 = vshll.u32 %v346_v32, %v41_v20  ;;  %v56_v35 = vshll.u32 %v347_v34, %v41_v20  ;;  %vm59_vm2 = vcmp.lt.s32.totalorder %v40_v19, 1  ;;  %vm60_vm3 = vcmp.lt.s32.totalorder %v40_v19, 2 }
  0x1f   :  { %v43_v37 = vshrl.u32 %v343_v26, %v42_v25  ;;  %v45_v38 = vshrl.u32 %v344_v28, %v42_v25  ;;  %v48_v39 = vshrl.u32 %v345_v30, %v42_v25  ;;  %v51_v40 = vshrl.u32 %v346_v32, %v42_v25 }
  0x20   :  { %v54_v41 = vshrl.u32 %v347_v34, %v42_v25  ;;  %v57_v43 = vshrl.u32 %v348_v42, %v42_v25  ;;  %vm62_vm4 = vcmp.lt.s32.totalorder %v40_v19, 4  ;;  %v146_v47 = vsub.s32 32, %v145_v23 }
  0x21   :  { %v46_v44 = vor.u32 %v45_v38, %v44_v27  ;;  %v49_v45 = vor.u32 %v48_v39, %v47_v29  ;;  %v52_v46 = vor.u32 %v51_v40, %v50_v31  ;;  %vm61_vm5 = vcmp.lt.s32.totalorder %v40_v19, 3 }
  0x22   :  { %v55_v48 = vor.u32 %v54_v41, %v53_v33  ;;  %v58_v49 = vor.u32 %v57_v43, %v56_v35  ;;  %v148_v50 = vshll.u32 %v343_v26, %v145_v23  ;;  %v151_v58 = vshll.u32 %v344_v28, %v145_v23 }
  0x23   :  { %v63_v51 = vsel %vm59_vm2, %v43_v37, %v46_v44  ;;  %v64_v52 = vsel %vm62_vm4, %v52_v46, 2102212464  ;;  %v67_v53 = vsel %vm59_vm2, %v46_v44, %v49_v45  ;;  %v71_v54 = vsel %vm59_vm2, %v49_v45, %v52_v46 }
  0x24   :  { %v65_v55 = vsel %vm61_vm5, %v49_v45, %v64_v52  ;;  %v68_v56 = vsel %vm62_vm4, %v55_v48, 920167782  ;;  %v72_v57 = vsel %vm62_vm4, %v58_v49, 1326507024  ;;  %v147_v61 = vshrl.u32 %v343_v26, %v146_v47 }
  0x25   :  { %v69_v59 = vsel %vm61_vm5, %v52_v46, %v68_v56  ;;  %v73_v60 = vsel %vm61_vm5, %v55_v48, %v72_v57  ;;  %v149_v62 = vshrl.u32 %v344_v28, %v146_v47  ;;  %v66_v63 = vsel %vm60_vm3, %v63_v51, %v65_v55 }
  0x26   :  { %v70_v5 = vsel %vm60_vm3, %v67_v53, %v69_v59  ;;  %v74_v7 = vsel %vm60_vm3, %v71_v54, %v73_v60  ;;  %v152_v8 = vshrl.u32 %v345_v30, %v146_v47  ;;  %v154_v15 = vshll.u32 %v345_v30, %v145_v23 }
  0x27   :  { %v397_v9 = vmul.u32.u64.low %v384_v22, %v74_v7  ;;  %v398_v10 = vmul.u32.u64.high %v384_v22, %v74_v7, %v397_v9  ;;  %v401_v11 = vmul.u32.u64.low %v384_v22, %v70_v5  ;;  %v402_v12 = vmul.u32.u64.high %v384_v22, %v70_v5, %v401_v11 }
  0x28   :  { %v150_v13 = vor.u32 %v149_v62, %v148_v50  ;;  %v153_v14 = vor.u32 %v152_v8, %v151_v58  ;;  %v155_v16 = vshrl.u32 %v346_v32, %v146_v47  ;;  %v157_v17 = vshll.u32 %v346_v32, %v145_v23 }
  0x29   :  { %v158_v18 = vshrl.u32 %v347_v34, %v146_v47  ;;  %v160_v20 = vshll.u32 %v347_v34, %v145_v23  ;;  %v161_v21 = vshrl.u32 %v348_v42, %v146_v47  ;;  %v82_v19 = vmul.u32 %v384_v22, %v66_v63 }
  0x2a   :  { %v156_v25 = vor.u32 %v155_v16, %v154_v15  ;;  %vm163_vm6 = vcmp.lt.s32.totalorder %v388_v36, 1  ;;  %vm164_vm7 = vcmp.lt.s32.totalorder %v388_v36, 2  ;;  %vm84_vm8 = vc.u32 %v398_v10, %v401_v11 }
  0x2b   :  { %v85_v26 = vadd.s32 1, %v402_v12  ;;  %v159_v27 = vor.u32 %v158_v18, %v157_v17  ;;  %vm165_vm9 = vcmp.lt.s32.totalorder %v388_v36, 3  ;;  %v162_v28 = vor.u32 %v161_v21, %v160_v20 }
  0x2c   :  { %vm166_vm10 = vcmp.lt.s32.totalorder %v388_v36, 4  ;;  %v167_v29 = vsel %vm163_vm6, %v147_v61, %v150_v13  ;;  %v171_v23 = vsel %vm163_vm6, %v150_v13, %v153_v14  ;;  %v175_v32 = vsel %vm163_vm6, %v153_v14, %v156_v25 }
  0x2d   :  { %v86_v30 = vsel %vm84_vm8, %v85_v26, %v402_v12  ;;  %v168_v22 = vsel %vm166_vm10, %v156_v25, 2102212464  ;;  %v172_v31 = vsel %vm166_vm10, %v159_v27, 920167782  ;;  %v176_v37 = vsel %vm166_vm10, %v162_v28, 1326507024 }
  0x2e   :  { %v87_v33 = vadd.s32 %v86_v30, %v82_v19  ;;  %v169_v34 = vsel %vm165_vm9, %v153_v14, %v168_v22  ;;  %v173_v35 = vsel %vm165_vm9, %v156_v25, %v172_v31  ;;  %v177_v40 = vsel %vm165_vm9, %v159_v27, %v176_v37 }
  0x2f   :  { %v170_v38 = vsel %vm164_vm7, %v167_v29, %v169_v34  ;;  %v174_v39 = vsel %vm164_vm7, %v171_v23, %v173_v35  ;;  %v178_v42 = vsel %vm164_vm7, %v175_v32, %v177_v40  ;;  %v83_v61 = vadd.s32 %v401_v11, %v398_v10 }
  0x30   :  { %v88_v41 = vadd.s32 536870912, %v87_v33  ;;  %v419_v43 = vmul.u32.u64.low %v386_v24, %v174_v39  ;;  %v420_v44 = vmul.u32.u64.high %v386_v24, %v174_v39, %v419_v43  ;;  %v186_v48 = vmul.u32 %v386_v24, %v170_v38 }
  0x31   :  { %v423_v45 = vmul.u32.u64.low %v386_v24, %v178_v42  ;;  %v424_v46 = vmul.u32.u64.high %v386_v24, %v178_v42, %v423_v45  ;;  %vm119_vm5 = vweird.f32 %v371_v2  ;;  %vm237_vm6 = vcmp.gt.f32.partialorder %v366_v0, 0.0 }
  0x32   :  { %v89_v47 = vshrl.u32 %v88_v41, 30  ;;  %v189_v50 = vadd.s32 1, %v420_v44  ;;  %vm223_vm10 = vweird.f32 %v374_v3 }
  0x33   :  { %vm188_vm11 = vc.u32 %v424_v46, %v419_v43  ;;  %v187_v20 = vadd.s32 %v419_v43, %v424_v46 }
  0x34   :  { %v90_v49 = vshll.u32 %v89_v47, 30  ;;  %v190_v36 = vsel %vm188_vm11, %v189_v50, %v420_v44  ;;  %v113_v27 = vsub.s32 4, %v89_v47  ;;  %vm238_vm11 = vcmp.gt.f32.partialorder %v368_v1, 0.0 }
  0x35   :  { %v191_v52 = vadd.s32 %v190_v36, %v186_v48 }
  0x36   :  { %v91_v51 = vsub.s32 %v87_v33, %v90_v49  ;;  %v114_v33 = vsel %vm29_vm14, %v113_v27, %v89_v47 }
  0x37   :  { %v192_v54 = vadd.s32 536870912, %v191_v52  ;;  %v116_v4 = vsel %vm435_vm15, 0, %v114_v33 }
  0x38   :  { %v93_v53 = vsub.s32 0, %v91_v51  ;;  %v120_v41 = vadd.s32 3, %v116_v4 }
  0x39   :  { %v193_v56 = vshrl.u32 %v192_v54, 30 }
  0x3a   :  { %v263_v55 = vmin.u32 %v93_v53, %v91_v51  ;;  %v121_v46 = vand.u32 3, %v120_v41 }
  0x3b   :  { %v194_v58 = vshll.u32 %v193_v56, 30  ;;  %v217_v40 = vsub.s32 4, %v193_v56 }
  0x3c   :  { %v95_v57 = vclz %v263_v55  ;;  %vm126_vm2 = vcmp.eq.s32.totalorder %v121_v46, 2  ;;  %vm123_vm3 = vcmp.eq.s32.totalorder %v121_v46, 0  ;;  %vm122_vm4 = vcmp.lt.s32.totalorder %v121_v46, 2 }
  0x3d   :  { %v195_v60 = vsub.s32 %v191_v52, %v194_v58  ;;  %v218_v44 = vsel %vm133_vm0, %v217_v40, %v193_v56 }
  0x3e   :  { %v264_v59 = vadd.s32 4294967294, %v95_v57  ;;  %v220_v47 = vsel %vm132_vm1, 0, %v218_v44 }
  0x3f   :  { %v197_v62 = vsub.s32 0, %v195_v60 }
  0x40   :  { %vm265_vm12 = vcmp.lt.s32.totalorder %v264_v59, 0 }
  0x41   :  { %v98_v24 = vsel %vm265_vm12, 0, %v264_v59  ;;  %v267_v8 = vmin.u32 %v197_v62, %v195_v60 }
  0x42   :  { %v99_v63 = vsub.s32 32, %v98_v24  ;;  %v100_v5 = vshll.u32 %v91_v51, %v98_v24  ;;  %v103_v7 = vsub.s32 4294967266, %v98_v24  ;;  %v224_v51 = vadd.s32 3, %v220_v47 }
  0x43   :  { %v199_v13 = vclz %v267_v8 }
  0x44   :  { %v101_v9 = vshrl.u32 %v83_v61, %v99_v63  ;;  %v104_v12 = vadd.s32 127, %v103_v7  ;;  %v225_v54 = vand.u32 3, %v224_v51 }
  0x45   :  { %v268_v16 = vadd.s32 4294967294, %v199_v13 }
  0x46   :  { %v102_v14 = vor.u32 %v101_v9, %v100_v5  ;;  %v105_v15 = vshll.u32 %v104_v12, 23  ;;  %vm230_vm7 = vcmp.eq.s32.totalorder %v225_v54, 2  ;;  %vm227_vm8 = vcmp.eq.s32.totalorder %v225_v54, 0 }
  0x47   :  { %vm269_vm13 = vcmp.lt.s32.totalorder %v268_v16, 0  ;;  %vm226_vm9 = vcmp.lt.s32.totalorder %v225_v54, 2 }
  0x48   :  { %v106_v17 = vor.u32 4788187, %v105_v15  ;;  %v109_v18 = vcvt.s32.f32 %v102_v14  ;;  %v202_v10 = vsel %vm269_vm13, 0, %v268_v16 }
  0x49   :  { %v203_v11 = vsub.s32 32, %v202_v10  ;;  %v204_v19 = vshll.u32 %v195_v60, %v202_v10  ;;  %v207_v25 = vsub.s32 4294967266, %v202_v10 }
  0x4a   :  { %v107_v21 = vand.u32 2147483647, %v106_v17 }
  0x4b   :  { %v205_v28 = vshrl.u32 %v187_v20, %v203_v11  ;;  %v208_v29 = vadd.s32 127, %v207_v25 }
  0x4c   :  { %v110_v26 = vmul.f32 %v109_v18, %v107_v21 }
  0x4d   :  { %v206_v22 = vor.u32 %v205_v28, %v204_v19  ;;  %v209_v31 = vshll.u32 %v208_v29, 23 }
  0x4e   :  { %v111_v30 = vxor.u32 2147483648, %v110_v26 }
  0x4f   :  { %v210_v35 = vor.u32 4788187, %v209_v31  ;;  %v213_v37 = vcvt.s32.f32 %v206_v22 }
  0x50   :  { %v112_v32 = vsel %vm29_vm14, %v111_v30, %v110_v26 }
  0x51   :  { %v115_v34 = vsel %vm435_vm15, %v371_v2, %v112_v32  ;;  %v211_v38 = vand.u32 2147483647, %v210_v35 }
  0x52   :  { %288 = vcosq.f32 %v115_v34 }
  0x53   :  { %290 = vsinq.f32 %v115_v34  ;;  %v214_v39 = vmul.f32 %v213_v37, %v211_v38 }
  0x55   :  { %v215_v42 = vxor.u32 2147483648, %v214_v39 }
  0x57   :  { %v216_v43 = vsel %vm133_vm0, %v215_v42, %v214_v39 }
  0x58   :  { %v219_v45 = vsel %vm132_vm1, %v374_v3, %v216_v43 }
  0x59   :  { %292 = vcosq.f32 %v219_v45 }
  0x5a   :  { %294 = vsinq.f32 %v219_v45 }
  0x5f   :  { %v289_v48 = vpop.eup %288 }
  0x60   :  { %v291_v49 = vpop.eup %290  ;;  %v127_v50 = vxor.u32 2147483648, %v289_v48 }
  0x61   :  { %v124_v36 = vxor.u32 2147483648, %v291_v49 }
  0x62   :  { %v128_v6 = vsel %vm126_vm2, %v127_v50, %v291_v49 }
  0x63   :  { %v125_v52 = vsel %vm123_vm3, %v289_v48, %v124_v36 }
  0x64   :  { %v129_v53 = vsel %vm122_vm4, %v125_v52, %v128_v6 }
  0x65   :  { %v130_v55 = vsel %vm119_vm5, nan, %v129_v53 }
  0x66   :  { %v235_v56 = vmul.f32 0.014142135, %v130_v55  ;;  %v293_v57 = vpop.eup %292 }
  0x67   :  { %v295_v59 = vpop.eup %294  ;;  %v231_v60 = vxor.u32 2147483648, %v293_v57 }
  0x68   :  { %v239_v58 = vsel %vm237_vm6, %v366_v0, %v235_v56  ;;  %v228_v61 = vxor.u32 2147483648, %v295_v59 }
  0x69   :  { %241 = vst [vmem:[#allocation5] sm:$0xff] %v239_v58  ;;  %v232_v2 = vsel %vm230_vm7, %v231_v60, %v295_v59 }
  0x6a   :  { %v229_v24 = vsel %vm227_vm8, %v293_v57, %v228_v61 }
  0x6b   :  { %v233_v62 = vsel %vm226_vm9, %v229_v24, %v232_v2 }
  0x6c   :  { %v234_v63 = vsel %vm223_vm10, nan, %v233_v62 }
  0x6d   :  { %v236_v5 = vmul.f32 0.014142135, %v234_v63 }
  0x6f   :  { %v240_v0 = vsel %vm238_vm11, %v368_v1, %v236_v5 }
  0x70   :  { %242 = vst [vmem:[#allocation5 + $0x8] sm:$0xff] %v240_v0 }
  0x71   :  { %327 = shalt.err (!%p324_p9)
}
  0x72   :  { %254 = dma.vmem_to_hbm [thread:$0]  %s249_s13, 256, %s461_s1, [#allocation4], %s341_s9, %s341_s9, %s342_s10  }
  0x73   :  { %338 = dma.done.wait [#allocation4], 256  }
  0x74   :  { %339 = vsyncadd [#allocation4], 4294967040 }
  0x75   :  { %258 = vsyncpa [#allocation3], 1 }
  0x76   :  { %259 = vsyncpa [#allocation4], 1 }

</bundles_post_ra>
